<compile_context>
chip_gen: v6e
topology: v6e:2x2x1
jax: 0.10.0
libtpu: 0.0.40
codegen_flags: <defaults>
</compile_context>

<pallas_src>
import jax
import jax.numpy as jnp
import numpy as np
from jax.experimental import pallas as pl
from jax.experimental.pallas import tpu as pltpu

HIGHEST = jax.lax.Precision.HIGHEST


def _round_up(n, m):
    return (n + m - 1) // m * m


# ------------------------------------------------------------- kernel 1 ----
def _colsum_kernel(x_ref, o_ref):
    """Per-tile partial column sums of x, folded to 128 lanes.

    x_ref: (K, NC, TILE_B)   o_ref: (K, NC, 128)
    Pure VPU adds over lane-aligned 128-wide chunks (no XLU, no reshapes);
    grid axis is 'parallel' so v7x's two TensorCores split the batch.
    """
    tile_b = x_ref.shape[-1]
    acc = x_ref[:, :, 0:128]
    for c in range(1, tile_b // 128):
        acc = acc + x_ref[:, :, c * 128:(c + 1) * 128]
    o_ref[...] = acc


# ------------------------------------------------------------- kernel 2 ----
def _rowwise_kernel(x_ref, w1_ref, nw_ref, wl1_ref, bl1_ref, wl2_ref,
                    bl2_ref, wl3_ref, bl3_ref, wt_ref, o_ref):
    """Per-row compute with batch on lanes.

    x_ref:  (K, NC, TILE_B)  permuted/transposed input tile
    w1_ref: (K, NC, 1)       depthwise conv1 weights (permuted)
    nw_ref: (NC, 1)          softmax-normalized weights (finished in epilogue)
    wl1/wl2: (16, NC)/(32,16) torch-layout (out,in) Linear weights
    bl1/bl2/wl3: (16,1)/(32,1)/(32,1) columns;  bl3, wt: (1,1) SMEM scalars
    o_ref:  (1, TILE_B)      lane-dense y3 row
    """
    k_groups = x_ref.shape[0]

    # depthwise conv + group-of-K sum: exact f32 on the VPU (no MXU, no iota)
    y1s = x_ref[0] * w1_ref[0]                              # (NC, T)
    for k in range(1, k_groups):
        y1s = y1s + x_ref[k] * w1_ref[k]

    # y3_1 = sigmoid(nw . y1s): lane-dense broadcast-mul + sublane reduce (XLU)
    y3_1 = jax.nn.sigmoid(jnp.sum(nw_ref[...] * y1s, axis=0, keepdims=True))

    # small MLP, batch on lanes: W(out,in) @ act -> lane-dense N=TILE_B on MXU
    h = jax.nn.sigmoid(
        jnp.dot(wl1_ref[...], y1s, preferred_element_type=jnp.float32,
                precision=HIGHEST) + bl1_ref[...])          # (16, T)
    h = jax.nn.sigmoid(
        jnp.dot(wl2_ref[...], h, preferred_element_type=jnp.float32,
                precision=HIGHEST) + bl2_ref[...])          # (32, T)
    # final 32 -> 1 projection as VPU broadcast-mul + sublane reduce (no M=1 MXU)
    y3_2 = jax.nn.sigmoid(
        jnp.sum(wl3_ref[...] * h, axis=0, keepdims=True) + bl3_ref[0, 0])

    wt = wt_ref[0, 0]
    o_ref[...] = y3_1 * wt + y3_2 * (1.0 - wt)              # (1, T) dense store


# ------------------------------------------------------------------ params --
def init_params(key, input1, input2):
    ks = jax.random.split(key, 12)

    def init(k, shape, scale=0.1):
        return jax.random.normal(k, shape, jnp.float32) * scale

    # Torch layouts: Linear weights are (out, in); depthwise conv1d = (C,) scale.
    return dict(
        w1=init(ks[0], (input1,)),            # Conv1d(input1, input1, 1, groups=input1)
        w2=init(ks[1], (input2,)),            # Conv1d(input2, input2, 1, groups=input2)
        wnw=init(ks[2], (input2, input2)),    # layer_normalized_weight Linear
        bnw=init(ks[3], (input2,)),
        wl1=init(ks[4], (16, input2)),        # layer3_2 Linear 1
        bl1=init(ks[5], (16,)),
        wl2=init(ks[6], (32, 16)),            # layer3_2 Linear 2
        bl2=init(ks[7], (32,)),
        wl3=init(ks[8], (1, 32)),             # layer3_2 Linear 3
        bl3=init(ks[9], (1,)),
        wwt=init(ks[10], (1, input1)),        # layer_weight Linear
        bwt=init(ks[11], (1,)),
    )


# ----------------------------------------------------------------- wrapper --
def gmz_forward(x_ncl, mean_vec, params, K, num_criteria, max_tile_b=32768):
    f32 = jnp.float32
    x2d = x_ncl[:, :, 0].astype(f32)                        # (B, C1) from NCL
    B, C1 = x2d.shape
    NC = num_criteria
    assert C1 == K * NC

    # channel permutation: new row k*NC + g  <-  original channel g*K + k
    perm = np.arange(C1).reshape(NC, K).T.reshape(-1)

    # batch-on-lanes layout ("single biggest lever"): x^T with permuted channels
    # so the group-of-K sum is a contiguous leading-axis multiply-add.
    # TODO(synk): if the caller can supply X pre-transposed (C1, B), this
    # one-time XLA transpose disappears entirely.
    x_t = jnp.transpose(x2d[:, perm])                       # (C1, B)

    # TILE_B: multiple of 128, as large as the VMEM budget allows (sweep 8K-64K);
    # clamp so the per-step footprint stays ~<=24 MiB (headroom on v7x's 64 MiB).
    per_col_bytes = 4 * (2 * C1 + 2 * NC + 16 + 32 + 8)
    tile_cap = max(128, (24 * 1024 * 1024 // per_col_bytes) // 128 * 128)
    TILE_B = int(min(max_tile_b, tile_cap, _round_up(B, 128)))
    B_pad = _round_up(B, TILE_B)
    num_tiles = B_pad // TILE_B
    if B_pad != B:
        x_t = jnp.pad(x_t, ((0, 0), (0, B_pad - B)))        # zero cols: no effect
    x_t3 = x_t.reshape(K, NC, B_pad)                        # free view, k-major

    cparams = pltpu.CompilerParams(
        dimension_semantics=("parallel",),                  # megacore split (v7x)
        vmem_limit_bytes=48 * 1024 * 1024)

    # -------- pass 1: per-tile partial column sums of x (parallel) ----------
    partials = pl.pallas_call(
        _colsum_kernel,
        grid=(num_tiles,),
        in_specs=[pl.BlockSpec((K, NC, TILE_B), lambda i: (0, 0, i))],
        out_specs=pl.BlockSpec((K, NC, 128), lambda i: (0, 0, i)),
        out_shape=jax.ShapeDtypeStruct((K, NC, num_tiles * 128), f32),
        compiler_params=cparams,
        cost_estimate=pl.CostEstimate(
            flops=B_pad * C1, transcendentals=0,
            bytes_accessed=4 * (B_pad * C1 + num_tiles * 128 * C1)),
    )(x_t3)

    # -------- tiny exact JAX epilogue: batch mean -> nw (softmax) and wt -----
    w1p = params["w1"][perm].reshape(K, NC)                 # permuted conv1 scales
    colsum = jnp.sum(partials, axis=2)                      # (K, NC) batch sums of x
    mean_y1s = jnp.sum(w1p * colsum, axis=0) / B            # (NC,) batch mean of y1s
    mean_y2 = mean_y1s * params["w2"]                       # per-channel conv2
    logits = jnp.dot(params["wnw"], mean_y2, precision=HIGHEST) + params["bnw"]
    nw = jax.nn.softmax(logits)                             # exact softmax (NC,)
    wt = jax.nn.sigmoid(
        jnp.dot(params["wwt"], mean_vec.astype(f32), precision=HIGHEST)
        + params["bwt"])                                    # (1,)

    # -------- pass 2: per-row kernel (recomputes y1s; no y1s HBM round-trip) -
    def const_spec(a):
        nd = a.ndim
        return pl.BlockSpec(a.shape, lambda i, _nd=nd: (0,) * _nd)

    smem = pl.BlockSpec(memory_space=pltpu.MemorySpace.SMEM)

    w1p3 = w1p.reshape(K, NC, 1)
    nw_col = nw.reshape(NC, 1)
    bl1c = params["bl1"].reshape(16, 1)
    bl2c = params["bl2"].reshape(32, 1)
    wl3c = params["wl3"].reshape(32, 1)
    bl3s = params["bl3"].reshape(1, 1)
    wts = wt.reshape(1, 1)

    y3_row = pl.pallas_call(
        _rowwise_kernel,
        grid=(num_tiles,),
        in_specs=[
            pl.BlockSpec((K, NC, TILE_B), lambda i: (0, 0, i)),  # x tile
            const_spec(w1p3),                                    # conv1 scales
            const_spec(nw_col),                                  # normalized weights
            const_spec(params["wl1"]),
            const_spec(bl1c),
            const_spec(params["wl2"]),
            const_spec(bl2c),
            const_spec(wl3c),
            smem,                                                # bl3 scalar
            smem,                                                # wt scalar
        ],
        out_specs=pl.BlockSpec((1, TILE_B), lambda i: (0, i)),   # lane-dense y3 row
        out_shape=jax.ShapeDtypeStruct((1, B_pad), f32),
        compiler_params=cparams,
        cost_estimate=pl.CostEstimate(
            flops=B_pad * 2 * (C1 + NC + NC * 16 + 16 * 32 + 32 + 2),
            transcendentals=B_pad * 50,
            bytes_accessed=4 * (B_pad * C1 + B_pad
                                + C1 + NC + 16 * NC + 16 + 16 * 32 + 32 + 34)),
    )(x_t3, w1p3, nw_col, params["wl1"], bl1c, params["wl2"], bl2c,
      wl3c, bl3s, wts)

    y3 = y3_row.reshape(B_pad, 1)[:B]                       # back to (B, 1)
    return y3, wt.reshape(1), nw.reshape(NC)


# ----------------------------------------------------------- pure-JAX ref ---
def gmz_reference(x_ncl, mean_vec, params, K, num_criteria):
    f32 = jnp.float32
    x2d = x_ncl[:, :, 0].astype(f32)
    B, C1 = x2d.shape
    NC = num_criteria
    y1 = x2d * params["w1"][None, :]
    y1s = y1.reshape(B, NC, K).sum(axis=2)
    y2 = y1s * params["w2"][None, :]
    mean_y2 = jnp.mean(y2, axis=0)
    nw = jax.nn.softmax(jnp.dot(params["wnw"], mean_y2, precision=HIGHEST)
                        + params["bnw"])
    y3_1 = jax.nn.sigmoid(jnp.dot(y1s, nw, precision=HIGHEST)[:, None])
    h = jax.nn.sigmoid(jnp.dot(y1s, params["wl1"].T, precision=HIGHEST)
                       + params["bl1"])
    h = jax.nn.sigmoid(jnp.dot(h, params["wl2"].T, precision=HIGHEST)
                       + params["bl2"])
    y3_2 = jax.nn.sigmoid(jnp.dot(h, params["wl3"].T, precision=HIGHEST)
                          + params["bl3"])
    wt = jax.nn.sigmoid(jnp.dot(params["wwt"], mean_vec.astype(f32),
                                precision=HIGHEST) + params["bwt"])
    y3 = y3_1 * wt + y3_2 * (1.0 - wt)
    return y3, wt.reshape(1), nw.reshape(NC)


if __name__ == "__main__":
    # small, module-consistent shapes
    num_criteria = 4            # input2
    K = 2
    input1 = K * num_criteria   # 8
    train_size = 300            # small; with max_tile_b=128 -> 3 batch tiles

    key = jax.random.PRNGKey(0)
    k_x, k_mean, k_params = jax.random.split(key, 3)

    x = jax.random.normal(k_x, (train_size, input1, 1), jnp.float32)  # NCL, L=1
    mean = jax.random.normal(k_mean, (input1,), jnp.float32)
    params = init_params(k_params, input1, num_criteria)

    # max_tile_b=128 exercises the multi-tile grid path at this tiny size;
    # production default (32768) is used when max_tile_b is left unset.
    y3, weight, normalized_weights = gmz_forward(
        x, mean, params, K, num_criteria, max_tile_b=128)
    jax.block_until_ready((y3, weight, normalized_weights))

    assert y3.shape == (train_size, 1)
    assert weight.shape == (1,)
    assert normalized_weights.shape == (num_criteria,)

    # correctness vs pure-JAX reference (exact softmax + HIGHEST-precision dots)
    y3_r, wt_r, nw_r = gmz_reference(x, mean, params, K, num_criteria)
    assert jnp.allclose(y3, y3_r, atol=1e-4, rtol=1e-4), float(jnp.max(jnp.abs(y3 - y3_r)))
    assert jnp.allclose(weight, wt_r, atol=1e-4, rtol=1e-4)
    assert jnp.allclose(normalized_weights, nw_r, atol=1e-4, rtol=1e-4)

    print("KERNEL_OK")
</pallas_src>

<mosaic_0001>
module attributes {stable_mosaic.version = 11 : i64} {
  func.func @_colsum_kernel(%arg0: i32, %arg1: memref<2x4x128xf32, #tpu.memory_space<vmem>>, %arg2: memref<2x4x128xf32, #tpu.memory_space<vmem>>) attributes {dimension_semantics = [#tpu.dimension_semantics<parallel>], iteration_bounds = array<i64: 3>, scalar_prefetch = 0 : i64, scratch_operands = 0 : i64, tpu.core_type = #tpu.core_type<tc>, window_params = [{transform_indices = @transform_0, window_bounds = array<i64: 2, 4, 128>}, {transform_indices = @transform_1, window_bounds = array<i64: 2, 4, 128>}]} {
    %c0 = arith.constant 0 : index
    %c0_0 = arith.constant 0 : index
    %c0_1 = arith.constant 0 : index
    %0 = vector.load %arg1[%c0, %c0_0, %c0_1] : memref<2x4x128xf32, #tpu.memory_space<vmem>>, vector<2x4x128xf32>
    %c0_2 = arith.constant 0 : index
    %c0_3 = arith.constant 0 : index
    %c0_4 = arith.constant 0 : index
    %1 = vector.load %arg2[%c0_2, %c0_3, %c0_4] : memref<2x4x128xf32, #tpu.memory_space<vmem>>, vector<2x4x128xf32>
    tpu.vector_store %arg2[%c0_2, %c0_3, %c0_4], %0 {strides = array<i32>} : memref<2x4x128xf32, #tpu.memory_space<vmem>>, vector<2x4x128xf32>,
    return
  }
  func.func @transform_0(%arg0: i32) -> (i32, i32, i32) {
    %c0_i32 = arith.constant 0 : i32
    %c0_i32_0 = arith.constant 0 : i32
    %c0_i32_1 = arith.constant 0 : i32
    return %c0_i32, %c0_i32_0, %arg0 : i32, i32, i32
  }
  func.func @transform_1(%arg0: i32) -> (i32, i32, i32) {
    %c0_i32 = arith.constant 0 : i32
    %c0_i32_0 = arith.constant 0 : i32
    %c0_i32_1 = arith.constant 0 : i32
    return %c0_i32, %c0_i32_0, %arg0 : i32, i32, i32
  }
}

</mosaic_0001>

<bundles_post_ra>
// kernel: tpu_custom_call.1
= control target key start
LH: loop header
LB: loop body
LE: loop exit
PB: predicated region body
PF: predicated region fallthrough
CT: control target
= control target key end

     0   :  { %6 = vsyncpa [#allocation3], 0  ;;  %s554_s0 = inlined_call_operand.hbm [shape: f32[2,4,384], index: 0, kind: input, shape index: {}]   ;;  %s555_s1 = inlined_call_operand.hbm [shape: f32[2,4,384], index: 1, kind: output, shape index: {}]  }
   0x1   :  { %8 = vsyncpa [#allocation3 + $0x1], 0 }
   0x2   :  { %9 = vsyncpa [#allocation4], 0 }
   0x3   :  { %11 = vsyncpa [#allocation4 + $0x1], 0  ;;  %s400_s6 = smov 0   ;;  %s402_s7 = smov 0  }
   0x4   :  { %s404_s8 = smov 0   ;;  %s406_s9 = smov 0  }
   0x5 LB: > { %s421_s10 = sadd.s32 4294967295, %s380_s9   ;;  %s224_s11 = sadd.s32 4294967294, %s380_s9   ;;  %s380_s9 = sphi %s406_s9, %s570_s9   ;;  %s376_s8 = sphi %s404_s8, %s569_s8   ;;  %s372_s7 = sphi %s402_s7, %s568_s7   ;;  %s368_s6 = sphi %s400_s6, %s567_s6  }
   0x6   : > { %s425_s12 = sadd.s32 1, %s380_s9   ;;  %s24_s13 = sadd.s32 1, %s376_s8 }
   0x7   : > { %s21_s14 = ssub.s32 %s380_s9, %s425_s12  ;;  %p31_p0 = scmp.ne.s32.totalorder %s376_s8, %s372_s7 }
   0x8   : > { %p22_p1 = scmp.eq.s32.totalorder %s21_s14, 0  ;;  %p32_p2 = scmp.eq.s32.totalorder %s380_s9, 0 }
   0x9   : > { %p37_p3 = scmp.ne.s32.totalorder %s372_s7, %s368_s6  ;;  %p38_p4 = scmp.eq.s32.totalorder %s421_s10, 0 }
   0xa   : > { %s437_s15 = scalar_select %p22_p1, %s376_s8, %s24_s13  }
   0xb   : > { %p439_p5 = por %p32_p2, %p31_p0  ;;  %p443_p6 = por %p38_p4, %p37_p3 }
   0xc   : > { %p61_p7 = scmp.eq.s32.totalorder %s421_s10, 2  ;;  %p67_p8 = scmp.eq.s32.totalorder %s224_s11, 2 }
   0xd   : > { %s559_s17 = scalar_select %p443_p6, 1, 0 }
   0xe   : > { %p248_p9 = scmp.lt.s32.totalorder %s380_s9, 3  ;;  %p449_p10 = por %p61_p7, %p31_p0 }
   0xf   : > { %p453_p11 = por %p67_p8, %p37_p3  ;;  %s87_s20 = sand.u32 1, %s376_s8  }
  0x10   : > { %s560_s18 = scalar_select %p449_p10, 1, 0 }
  0x11   : > { %s561_s19 = scalar_select %p453_p11, 1, 0 }
  0x12   : > { %s228_s21 = sshll.u32 %s380_s9, 6  ;;  %s227_s22 = sshll.u32 %s87_s20, 3 }
  0x13   : > { %s462_s25 = scalar_lea.hbm %s554_s0, %s228_s21  ;;  %s91_s26 = scalar_lea.vmem [#allocation2], %s227_s22 }
  0x14   : > { %s97_s27 = sshll.u32 %s91_s26, 4  ;;  %p466_p12 = pnand %p248_p9, %p439_p5  ;;  %s470_s27 = int_to_ptr.vmem [resolvable:$true] %s97_s27 }
  0x15   : > { %s473_s29 = scalar_lea.sflag [#allocation3], %s87_s20  ;;  %s288_s30 = scalar_lea.hbm %s462_s25, 128 }
  0x16   : > { %p289_p0 = scmp.ne.s32.totalorder %s462_s25, %s288_s30  ;;  %p290_p1 = pneg %p466_p12 }
  0x17   : > { %s293_s4 = scalar_lea.hbm %s554_s0, 384  ;;  %p294_p4 = scmp.lt.s32.totalorder %s462_s25, %s554_s0 }
  0x18   : > { %p291_p2 = pnand %p290_p1, %p289_p0  ;;  %p295_p5 = scmp.lt.s32.totalorder %s293_s4, %s288_s30 }
  0x1a   : > { %p292_p3 = pneg %p291_p2  ;;  %p296_p7 = por %p295_p5, %p294_p4 }
  0x1c   : > { %p297_p8 = pnand %p296_p7, %p292_p3 }
  0x1e   : > { %300 = shalt.err (!%p297_p8)
}
  0x1f   : > { %s301_s13 = scalar_lea.vmem %s470_s27, 128  ;;  %s382_s14 = smov [#allocation2]  }
  0x20   : > { %p302_p9 = scmp.ne.s32.totalorder %s470_s27, %s301_s13  ;;  %s306_s16 = sshll.u32 %s382_s14, 4  ;;  %s307_s16 = int_to_ptr.vmem [resolvable:$false] %s306_s16 }
  0x21   : > { %s308_s20 = scalar_lea.vmem %s307_s16, 256  ;;  %p309_p2 = scmp.lt.s32.totalorder %s470_s27, %s307_s16 }
  0x22   : > { %p304_p13 = pnand %p302_p9, %p290_p1  ;;  %p310_p11 = scmp.lt.s32.totalorder %s308_s20, %s301_s13 }
  0x24   : > { %p305_p0 = pneg %p304_p13  ;;  %p311_p10 = por %p310_p11, %p309_p2 }
  0x26   : > { %p312_p6 = pnand %p311_p10, %p305_p0 }
  0x28   : > { %315 = shalt.err (!%p312_p6)
}
  0x29   : > { %s383_s21 = smov 192   ;;  %s384_s22 = smov 64  }
  0x2a   : > { %s385_s23 = smov 4   ;;  %p105_p13 = scmp.lt.s32.totalorder %s380_s9, 4 }
  0x2b   : > { %243 = dma.hbm_to_vmem [thread:$0]  (!%p466_p12), %s462_s25, 128, %s470_s27, %s473_s29, %s383_s21, %s384_s22, %s385_s23  }
  0x2c   : > { %p563_p1 = scmp.ge.s32.totalorder %s380_s9, 1 }
  0x2e   : > { %p106_p3 = pnand %p563_p1, %p105_p13 }
  0x2f   : > { %s498_s24 = sand.u32 (!%p106_p3), 1, %s372_s7   ;;  %p564_p6 = scmp.ne.s32.totalorder (!%p106_p3), %s559_s17, 0 }
  0x30   : > { %109 = sbr.rel (%p106_p3) target bundleno = 81 (0x51), region = 24  ;;  %s230_s26 = sshll.u32 (!%p106_p3), %s498_s24, 3 }
  0x31   : > { %s112_s30 = scalar_lea.sflag (!%p106_p3), [#allocation3], %s498_s24  ;;  %s115_s2 = scalar_lea.vmem (!%p106_p3), [#allocation2], %s230_s26 }
  0x35   : > { %359 = dma.done.wait (%p564_p6), %s112_s30, 128  }
  0x36   : > { %361 = vsyncadd (%p564_p6), %s112_s30, 4294967168  ;;  %s133_s25 = scalar_lea.vmem [#allocation5], %s230_s26  ;;  %s233_s28 = sshll.u32 %s421_s10, 6  ;;  %v134_v0 = vld [vmem:[%s115_s2] sm:$0xff]  }
  0x37   : > { %s151_s27 = sshll.u32 %s133_s25, 4  ;;  %s512_s4 = scalar_lea.hbm %s555_s1, %s233_s28  ;;  %136 = vst [vmem:[%s133_s25] sm:$0xff] %v134_v0   ;;  %s507_s27 = int_to_ptr.vmem [resolvable:$true] %s151_s27 }
  0x38   : > { %s139_s17 = scalar_lea.sflag [#allocation4], %s498_s24  ;;  %s316_s5 = scalar_lea.vmem %s507_s27, 128 }
  0x39   : > { %p317_p10 = scmp.ne.s32.totalorder %s507_s27, %s316_s5  ;;  %p565_p11 = scmp.ne.s32.totalorder %s560_s18, 0 }
  0x3a   : > { %s386_s11 = smov [#allocation5]  }
  0x3b   : > { %p318_p12 = pnand %p317_p10, %p565_p11  ;;  %s320_s10 = sshll.u32 %s386_s11, 4  ;;  %s321_s10 = int_to_ptr.vmem [resolvable:$false] %s320_s10 }
  0x3c   : > { %s322_s13 = scalar_lea.vmem %s321_s10, 256  ;;  %p323_p5 = scmp.lt.s32.totalorder %s507_s27, %s321_s10 }
  0x3d   : > { %p319_p4 = pneg %p318_p12  ;;  %p324_p7 = scmp.lt.s32.totalorder %s322_s13, %s316_s5 }
  0x3f   : > { %p325_p8 = por %p324_p7, %p323_p5 }
  0x41   : > { %p326_p9 = pnand %p325_p8, %p319_p4 }
  0x43   : > { %329 = shalt.err (!%p326_p9)
}
  0x44   : > { %s330_s14 = scalar_lea.hbm %s512_s4, 128  ;;  %s334_s21 = scalar_lea.hbm %s555_s1, 384 }
  0x45   : > { %p331_p0 = scmp.ne.s32.totalorder %s512_s4, %s330_s14  ;;  %p335_p1 = scmp.lt.s32.totalorder %s512_s4, %s555_s1 }
  0x46   : > { %p336_p3 = scmp.lt.s32.totalorder %s334_s21, %s330_s14 }
  0x47   : > { %p332_p2 = pnand %p331_p0, %p565_p11 }
  0x48   : > { %p337_p6 = por %p336_p3, %p335_p1 }
  0x49   : > { %p333_p13 = pneg %p332_p2 }
  0x4b   : > { %p338_p10 = pnand %p337_p6, %p333_p13 }
  0x4d   : > { %341 = shalt.err (!%p338_p10)
}
  0x4e   : > { %s387_s26 = smov 64   ;;  %s388_s30 = smov 192  }
  0x4f   : > { %s389_s2 = smov 4  }
  0x50   : > { %238 = dma.vmem_to_hbm [thread:$0]  (%p565_p11), %s507_s27, 128, %s512_s4, %s139_s17, %s387_s26, %s388_s30, %s389_s2  }
  0x51 PF: > { %p249_p12 = scmp.ge.s32.totalorder %s380_s9, 2  ;;  %s166_s25 = sand.u32 1, %s368_s6  }
  0x52   : > { %p566_p4 = scmp.ne.s32.totalorder %s561_s19, 0  ;;  %s167_s28 = scalar_lea.sflag [#allocation4], %s166_s25 }
  0x54   : > { %p245_p5 = pnand %p249_p12, %p566_p4 }
  0x56   : > { %p246_p7 = pneg %p245_p5 }
  0x58   : > { %363 = dma.done.wait (%p246_p7), %s167_s28, 128  }
  0x59   : > { %365 = vsyncadd (%p246_p7), %s167_s28, 4294967168  ;;  %p14_p8 = scmp.ge.s32.totalorder %s425_s12, 5   ;;  %s567_s6 = smov %s372_s7 }
  0x5a   : > { %s568_s7 = smov %s376_s8  ;;  %s569_s8 = smov %s437_s15 }
  0x5b   : > { %s570_s9 = smov %s425_s12  ;;  %16 = sbr.rel (!%p14_p8) target bundleno = 5 (0x5), region = 69 }
  0x60   :  { %172 = vsyncpa [#allocation3], 1 }
  0x61   :  { %174 = vsyncpa [#allocation3 + $0x1], 1 }
  0x62   :  { %175 = vsyncpa [#allocation4], 1 }
  0x63   :  { %177 = vsyncpa [#allocation4 + $0x1], 1 }

</bundles_post_ra>
